<compile_context>
chip_gen: v6e
topology: v6e:2x2x1
jax: 0.10.0
libtpu: 0.0.40
codegen_flags: <defaults>
</compile_context>

<pallas_src>
import functools
import math

import jax
import jax.numpy as jnp
from jax.experimental import pallas as pl
from jax.experimental.pallas import tpu as pltpu

_LANE = 128        # TPU vreg lane width
_SUBLANE = 8       # TPU vreg sublane count (f32)
_MAX_TILE_B = 4096  # per-step batch tile cap (~5 MB of VMEM at this size)


def _round_up(x, m):
    return (x + m - 1) // m * m


def _gelu_exact(x):
    # nn.GELU() default = exact erf-based GELU. Shared by kernel and reference.
    return 0.5 * x * (1.0 + jax.lax.erf(x * (1.0 / math.sqrt(2.0))))


def _apply_std_exp(out, std_lo, std_hi):
    # exp() only on the std lane range; mask from a [1, OUT_pad] iota (broadcast
    # along sublanes is free in the select).
    col = jax.lax.broadcasted_iota(jnp.int32, (1, out.shape[1]), 1)
    in_std = (col >= std_lo) & (col < std_hi)
    return jnp.where(in_std, jnp.exp(out), out)


def _mdn_kernel_fused(obs_ref, w1_ref, b1_ref, w2_ref, b2_ref, out_ref,
                      *, std_lo, std_hi, precision):
    # Fused two-matmul MLP; W2 is block-diagonal (pi block | gaussian block) and
    # its zero blocks hide inside a single 128-lane MXU tile (2*H <= 128).
    h = jnp.dot(obs_ref[...], w1_ref[...],
                preferred_element_type=jnp.float32, precision=precision)
    h = _gelu_exact(h + b1_ref[...]).astype(w2_ref.dtype)
    out = jnp.dot(h, w2_ref[...],
                  preferred_element_type=jnp.float32, precision=precision)
    out = out + b2_ref[...]
    out_ref[...] = _apply_std_exp(out, std_lo, std_hi)


def _mdn_kernel_split(obs_ref, w1_ref, b1_ref, w2p_ref, w2g_ref, b2_ref, out_ref,
                      *, hp, std_lo, std_hi, precision):
    # 2*H > 128: layer 2 as two dots on lane-aligned halves of the hidden slab.
    h = jnp.dot(obs_ref[...], w1_ref[...],
                preferred_element_type=jnp.float32, precision=precision)
    h = _gelu_exact(h + b1_ref[...]).astype(w2p_ref.dtype)
    pi_out = jnp.dot(h[:, :hp], w2p_ref[...],
                     preferred_element_type=jnp.float32, precision=precision)
    g_out = jnp.dot(h[:, hp:], w2g_ref[...],
                    preferred_element_type=jnp.float32, precision=precision)
    pad_cols = g_out.shape[1] - pi_out.shape[1]
    if pad_cols:  # pi logits live in the first 128-lane tile only
        pi_out = jnp.concatenate(
            [pi_out, jnp.zeros((pi_out.shape[0], pad_cols), pi_out.dtype)], axis=1)
    out = pi_out + g_out + b2_ref[...]
    out_ref[...] = _apply_std_exp(out, std_lo, std_hi)


def pack_params(params, obs_dim, act_dim, hidden_size, n_components,
                matmul_dtype=jnp.bfloat16):
    """One-time fuse + lane-pad of the two sub-networks' weights (outside the hot path).

    matmul_dtype=bfloat16 (default) -> 1 MXU pass/dot on v6e/v7x, half the DMA bytes.
    matmul_dtype=float32           -> exact path (kernel uses Precision.HIGHEST).
    Biases always stay f32 and are added on the VPU after the dot.
    """
    H, K, A = hidden_size, n_components, act_dim
    assert K <= _LANE, "n_components must fit in one 128-lane tile"
    OUT = K + 2 * K * A                 # [pi logits | mean | std]
    OUT_pad = _round_up(OUT, _LANE)
    H2 = 2 * H

    if H2 <= _LANE:
        # Fused block-diagonal layer 2 (zero blocks free inside one MXU lane tile).
        H2_pad = _LANE
        w1 = (jnp.zeros((obs_dim, H2_pad), jnp.float32)
              .at[:, :H].set(params["w1_pi"]).at[:, H:H2].set(params["w1_g"]))
        b1 = (jnp.zeros((1, H2_pad), jnp.float32)
              .at[:, :H].set(params["b1_pi"]).at[:, H:H2].set(params["b1_g"]))
        w2 = (jnp.zeros((H2_pad, OUT_pad), jnp.float32)
              .at[:H, :K].set(params["w2_pi"]).at[H:H2, K:OUT].set(params["w2_g"]))
        b2 = (jnp.zeros((1, OUT_pad), jnp.float32)
              .at[:, :K].set(params["b2_pi"]).at[:, K:OUT].set(params["b2_g"]))
        return dict(w1=w1.astype(matmul_dtype), b1=b1,
                    w2=w2.astype(matmul_dtype), b2=b2)

    # Split mode: each hidden block gets its own lane-padded slot; layer 2 = two dots.
    Hp = _round_up(H, _LANE)
    w1 = (jnp.zeros((obs_dim, 2 * Hp), jnp.float32)
          .at[:, :H].set(params["w1_pi"]).at[:, Hp:Hp + H].set(params["w1_g"]))
    b1 = (jnp.zeros((1, 2 * Hp), jnp.float32)
          .at[:, :H].set(params["b1_pi"]).at[:, Hp:Hp + H].set(params["b1_g"]))
    pi_cols = min(_LANE, OUT_pad)       # pi logits need only the first lane tile
    w2_pi = jnp.zeros((Hp, pi_cols), jnp.float32).at[:H, :K].set(params["w2_pi"])
    w2_g = jnp.zeros((Hp, OUT_pad), jnp.float32).at[:H, K:OUT].set(params["w2_g"])
    b2 = (jnp.zeros((1, OUT_pad), jnp.float32)
          .at[:, :K].set(params["b2_pi"]).at[:, K:OUT].set(params["b2_g"]))
    return dict(w1=w1.astype(matmul_dtype), b1=b1,
                w2_pi=w2_pi.astype(matmul_dtype), w2_g=w2_g.astype(matmul_dtype), b2=b2)


@functools.partial(jax.jit, static_argnames=("act_dim", "n_components"))
def mdn_forward(obs, packed, *, act_dim, n_components):
    B, obs_dim = obs.shape
    K, A = n_components, act_dim
    OUT = K + 2 * K * A
    std_lo, std_hi = K + K * A, OUT

    fused = "w2" in packed
    w1, b1, b2 = packed["w1"], packed["b1"], packed["b2"]
    matmul_dtype = w1.dtype
    in_bytes = jnp.dtype(matmul_dtype).itemsize
    OUT_pad = b2.shape[1]
    # Exact f32 path -> true f32 matmul; bf16 path -> single MXU pass.
    precision = (jax.lax.Precision.HIGHEST if matmul_dtype == jnp.float32
                 else jax.lax.Precision.DEFAULT)

    # --- batch tiling -------------------------------------------------------
    n_tiles = pl.cdiv(B, _MAX_TILE_B)
    if B >= 2 * _SUBLANE:
        n_tiles = max(n_tiles, 2)       # >=2 tiles so v7x can shard across both TCs
    tile_b = _round_up(pl.cdiv(B, n_tiles), _SUBLANE)
    b_pad = n_tiles * tile_b            # per-tile padding waste < 8 rows

    obs_mx = obs.astype(matmul_dtype)
    if b_pad != B:
        obs_mx = jnp.pad(obs_mx, ((0, b_pad - B), (0, 0)))

    obs_spec = pl.BlockSpec((tile_b, obs_dim), lambda i: (i, 0))  # streamed over batch

    def const(shape):   # weights/biases: constant block index -> fetched once, VMEM-resident
        return pl.BlockSpec(shape, lambda i: (0, 0))

    if fused:
        w2 = packed["w2"]
        kernel = functools.partial(_mdn_kernel_fused,
                                   std_lo=std_lo, std_hi=std_hi, precision=precision)
        operands = (obs_mx, w1, b1, w2, b2)
        in_specs = [obs_spec, const(w1.shape), const(b1.shape),
                    const(w2.shape), const(b2.shape)]
        mxu_flops = 2 * b_pad * (obs_dim * w1.shape[1] + w2.shape[0] * w2.shape[1])
        weight_bytes = (w1.size + w2.size) * in_bytes + (b1.size + b2.size) * 4
    else:
        w2_pi, w2_g = packed["w2_pi"], packed["w2_g"]
        hp = w2_pi.shape[0]
        kernel = functools.partial(_mdn_kernel_split, hp=hp,
                                   std_lo=std_lo, std_hi=std_hi, precision=precision)
        operands = (obs_mx, w1, b1, w2_pi, w2_g, b2)
        in_specs = [obs_spec, const(w1.shape), const(b1.shape),
                    const(w2_pi.shape), const(w2_g.shape), const(b2.shape)]
        mxu_flops = 2 * b_pad * (obs_dim * w1.shape[1]
                                 + hp * w2_pi.shape[1] + hp * w2_g.shape[1])
        weight_bytes = ((w1.size + w2_pi.size + w2_g.size) * in_bytes
                        + (b1.size + b2.size) * 4)

    # VMEM budget derived from the chosen tile (double-buffered obs/out slabs +
    # resident weights), with slack; clamped to sane per-generation bounds.
    io_bytes = 2 * tile_b * obs_dim * in_bytes + 2 * tile_b * OUT_pad * 4
    vmem_limit = int(min(max(2 * (weight_bytes + io_bytes) + (4 << 20), 16 << 20),
                         60 << 20))

    cost = pl.CostEstimate(
        flops=int(mxu_flops),
        transcendentals=int(b_pad * (w1.shape[1] + OUT_pad)),   # erf on hidden + exp on out
        bytes_accessed=int(b_pad * obs_dim * in_bytes + weight_bytes
                           + b_pad * OUT_pad * 4))

    out_padded = pl.pallas_call(
        kernel,
        out_shape=jax.ShapeDtypeStruct((b_pad, OUT_pad), jnp.float32),
        grid=(n_tiles,),
        in_specs=in_specs,
        out_specs=pl.BlockSpec((tile_b, OUT_pad), lambda i: (i, 0)),
        compiler_params=pltpu.CompilerParams(
            dimension_semantics=("parallel",),     # v7x: batch tiles across both TCs
            vmem_limit_bytes=vmem_limit),
        cost_estimate=cost,
    )(*operands)

    out = out_padded[:B]
    pi_logits = out[:, :K]
    # torch: stack(mean.split(A, 1)).transpose(0, 1) == reshape(B, K, A) of the flat block.
    mean = out[:, K:std_lo].reshape(B, K, A)
    std = out[:, std_lo:std_hi].reshape(B, K, A)
    return pi_logits, mean, std


def init_params(key, obs_dim, act_dim, hidden_size, n_components):
    """Deterministic init mirroring nn.Linear default (uniform +/- 1/sqrt(fan_in))."""
    def linear(key, fan_in, fan_out):
        kw, kb = jax.random.split(key)
        bound = 1.0 / math.sqrt(fan_in)
        w = jax.random.uniform(kw, (fan_in, fan_out), jnp.float32, -bound, bound)
        b = jax.random.uniform(kb, (1, fan_out), jnp.float32, -bound, bound)
        return w, b

    k1, k2, k3, k4 = jax.random.split(key, 4)
    w1_pi, b1_pi = linear(k1, obs_dim, hidden_size)
    w2_pi, b2_pi = linear(k2, hidden_size, n_components)
    w1_g, b1_g = linear(k3, obs_dim, hidden_size)
    w2_g, b2_g = linear(k4, hidden_size, 2 * act_dim * n_components)
    return dict(w1_pi=w1_pi, b1_pi=b1_pi, w2_pi=w2_pi, b2_pi=b2_pi,
                w1_g=w1_g, b1_g=b1_g, w2_g=w2_g, b2_g=b2_g)


def mdn_reference(obs, params, act_dim, n_components):
    """Pure-JAX reference with the original (unfused) structure, exact f32 matmuls."""
    hi = jax.lax.Precision.HIGHEST
    h = _gelu_exact(jnp.dot(obs, params["w1_pi"], precision=hi) + params["b1_pi"])
    pi_logits = jnp.dot(h, params["w2_pi"], precision=hi) + params["b2_pi"]
    h = _gelu_exact(jnp.dot(obs, params["w1_g"], precision=hi) + params["b1_g"])
    g = jnp.dot(h, params["w2_g"], precision=hi) + params["b2_g"]
    ak = act_dim * n_components
    mean = g[:, :ak].reshape(-1, n_components, act_dim)
    std = jnp.exp(g[:, ak:]).reshape(-1, n_components, act_dim)
    return pi_logits, mean, std


if __name__ == "__main__":
    key = jax.random.PRNGKey(0)
    k_params, k_obs = jax.random.split(key)

    configs = [
        # (obs_dim, act_dim, hidden_size, n_components, batch)
        (16, 4, 32, 2, 8),    # fused block-diagonal layer-2 path (2*H <= 128)
        (16, 4, 96, 2, 20),   # split layer-2 path (2*H > 128) + multi-tile batch grid
    ]

    for idx, (obs_dim, act_dim, hidden_size, n_components, batch) in enumerate(configs):
        kp = jax.random.fold_in(k_params, idx)
        ko = jax.random.fold_in(k_obs, idx)
        params = init_params(kp, obs_dim, act_dim, hidden_size, n_components)
        obs = jax.random.normal(ko, (batch, obs_dim), jnp.float32)
        ref_pi, ref_mean, ref_std = mdn_reference(obs, params, act_dim, n_components)

        # Exact-f32 MXU path (matches torch float32 semantics).
        packed_f32 = pack_params(params, obs_dim, act_dim, hidden_size, n_components,
                                 matmul_dtype=jnp.float32)
        pi, mean, std = mdn_forward(obs, packed_f32,
                                    act_dim=act_dim, n_components=n_components)
        jax.block_until_ready((pi, mean, std))
        assert pi.shape == (batch, n_components)
        assert mean.shape == (batch, n_components, act_dim)
        assert std.shape == (batch, n_components, act_dim)
        assert jnp.allclose(pi, ref_pi, atol=1e-5), "f32 pi mismatch"
        assert jnp.allclose(mean, ref_mean, atol=1e-5), "f32 mean mismatch"
        assert jnp.allclose(std, ref_std, atol=1e-5), "f32 std mismatch"

        # bf16-input MXU path (perf default for v6e/v7x: 1 pass/dot, half the DMA bytes).
        packed_bf16 = pack_params(params, obs_dim, act_dim, hidden_size, n_components,
                                  matmul_dtype=jnp.bfloat16)
        pi_b, mean_b, std_b = mdn_forward(obs, packed_bf16,
                                          act_dim=act_dim, n_components=n_components)
        jax.block_until_ready((pi_b, mean_b, std_b))
        assert jnp.allclose(pi_b, ref_pi, atol=1e-1, rtol=1e-1), "bf16 pi mismatch"
        assert jnp.allclose(mean_b, ref_mean, atol=1e-1, rtol=1e-1), "bf16 mean mismatch"
        assert jnp.allclose(std_b, ref_std, atol=1e-1, rtol=1e-1), "bf16 std mismatch"

    # TODO(synk): OneHotCategorical / Normal distribution objects (and the sampling /
    # argmax logic in get_action, plus the debug print(std) in forward) are
    # torch.distributions wrappers with no Pallas equivalent; the kernel returns
    # their sufficient statistics (pi logits, mean, std).
    print("KERNEL_OK")
</pallas_src>

<mosaic_0001>
module attributes {stable_mosaic.version = 11 : i64} {
  func.func @_mdn_kernel_fused(%arg0: i32, %arg1: memref<8x16xf32, #tpu.memory_space<vmem>>, %arg2: memref<16x128xf32, #tpu.memory_space<vmem>>, %arg3: memref<1x128xf32, #tpu.memory_space<vmem>>, %arg4: memref<128x128xf32, #tpu.memory_space<vmem>>, %arg5: memref<1x128xf32, #tpu.memory_space<vmem>>, %arg6: memref<8x128xf32, #tpu.memory_space<vmem>>) attributes {dimension_semantics = [#tpu.dimension_semantics<parallel>], iteration_bounds = array<i64: 1>, scalar_prefetch = 0 : i64, scratch_operands = 0 : i64, tpu.core_type = #tpu.core_type<tc>, window_params = [{transform_indices = @transform_0, window_bounds = array<i64: 8, 16>}, {pipeline_mode = #tpu.pipeline_mode<synchronous>, transform_indices = @transform_1, window_bounds = array<i64: 16, 128>}, {pipeline_mode = #tpu.pipeline_mode<synchronous>, transform_indices = @transform_2, window_bounds = array<i64: 1, 128>}, {pipeline_mode = #tpu.pipeline_mode<synchronous>, transform_indices = @transform_3, window_bounds = array<i64: 128, 128>}, {pipeline_mode = #tpu.pipeline_mode<synchronous>, transform_indices = @transform_4, window_bounds = array<i64: 1, 128>}, {transform_indices = @transform_5, window_bounds = array<i64: 8, 128>}]} {
    %c0 = arith.constant 0 : index
    %c0_0 = arith.constant 0 : index
    %0 = vector.load %arg1[%c0, %c0_0] : memref<8x16xf32, #tpu.memory_space<vmem>>, vector<8x16xf32>
    %c0_1 = arith.constant 0 : index
    %c0_2 = arith.constant 0 : index
    %1 = vector.load %arg2[%c0_1, %c0_2] : memref<16x128xf32, #tpu.memory_space<vmem>>, vector<16x128xf32>
    %cst = arith.constant dense<0.000000e+00> : vector<8x128xf32>
    %2 = tpu.matmul %0, %1, %cst {dimension_numbers = #tpu.dot_dimension_numbers<[1], [0], [0], [1], [0, 0, 1, 1], [], []>, precision = #tpu.contract_precision<fp32>} : vector<8x16xf32>, vector<16x128xf32>, vector<8x128xf32> -> vector<8x128xf32>
    %c0_3 = arith.constant 0 : index
    %c0_4 = arith.constant 0 : index
    %3 = vector.load %arg3[%c0_3, %c0_4] : memref<1x128xf32, #tpu.memory_space<vmem>>, vector<1x128xf32>
    %4 = vector.broadcast %3 : vector<1x128xf32> to vector<8x128xf32>
    %5 = arith.addf %2, %4 : vector<8x128xf32>
    %cst_5 = arith.constant 5.000000e-01 : f32
    %6 = vector.broadcast %cst_5 : f32 to vector<8x128xf32>
    %7 = arith.mulf %6, %5 : vector<8x128xf32>
    %cst_6 = arith.constant 0.707106769 : f32
    %8 = vector.broadcast %cst_6 : f32 to vector<8x128xf32>
    %9 = arith.mulf %5, %8 : vector<8x128xf32>
    %10 = math.erf %9 : vector<8x128xf32>
    %cst_7 = arith.constant 1.000000e+00 : f32
    %11 = vector.broadcast %cst_7 : f32 to vector<8x128xf32>
    %12 = arith.addf %11, %10 : vector<8x128xf32>
    %13 = arith.mulf %7, %12 : vector<8x128xf32>
    %c0_8 = arith.constant 0 : index
    %c0_9 = arith.constant 0 : index
    %14 = vector.load %arg4[%c0_8, %c0_9] : memref<128x128xf32, #tpu.memory_space<vmem>>, vector<128x128xf32>
    %cst_10 = arith.constant dense<0.000000e+00> : vector<8x128xf32>
    %15 = tpu.matmul %13, %14, %cst_10 {dimension_numbers = #tpu.dot_dimension_numbers<[1], [0], [0], [1], [0, 0, 1, 1], [], []>, precision = #tpu.contract_precision<fp32>} : vector<8x128xf32>, vector<128x128xf32>, vector<8x128xf32> -> vector<8x128xf32>
    %c0_11 = arith.constant 0 : index
    %c0_12 = arith.constant 0 : index
    %16 = vector.load %arg5[%c0_11, %c0_12] : memref<1x128xf32, #tpu.memory_space<vmem>>, vector<1x128xf32>
    %17 = vector.broadcast %16 : vector<1x128xf32> to vector<8x128xf32>
    %18 = arith.addf %15, %17 : vector<8x128xf32>
    %19 = tpu.iota {dimensions = array<i32: 1>} : vector<1x128xi32>
    %c10_i32 = arith.constant 10 : i32
    %20 = vector.broadcast %c10_i32 : i32 to vector<1x128xi32>
    %21 = arith.cmpi sge, %19, %20 : vector<1x128xi32>
    %c18_i32 = arith.constant 18 : i32
    %22 = vector.broadcast %c18_i32 : i32 to vector<1x128xi32>
    %23 = arith.cmpi slt, %19, %22 : vector<1x128xi32>
    %24 = arith.andi %21, %23 : vector<1x128xi1>
    %25 = math.exp %18 : vector<8x128xf32>
    %26 = vector.shape_cast %24 : vector<1x128xi1> to vector<1x128xi1>
    %27 = vector.broadcast %26 : vector<1x128xi1> to vector<8x128xi1>
    %28 = arith.select %27, %25, %18 : vector<8x128xi1>, vector<8x128xf32>
    %c0_13 = arith.constant 0 : index
    %c0_14 = arith.constant 0 : index
    %29 = vector.load %arg6[%c0_13, %c0_14] : memref<8x128xf32, #tpu.memory_space<vmem>>, vector<8x128xf32>
    tpu.vector_store %arg6[%c0_13, %c0_14], %28 {strides = array<i32>} : memref<8x128xf32, #tpu.memory_space<vmem>>, vector<8x128xf32>,
    return
  }
  func.func @transform_0(%arg0: i32) -> (i32, i32) {
    %c0_i32 = arith.constant 0 : i32
    %c0_i32_0 = arith.constant 0 : i32
    return %arg0, %c0_i32 : i32, i32
  }
  func.func @transform_1(%arg0: i32) -> (i32, i32) {
    %c0_i32 = arith.constant 0 : i32
    %c0_i32_0 = arith.constant 0 : i32
    %c0_i32_1 = arith.constant 0 : i32
    return %c0_i32, %c0_i32_0 : i32, i32
  }
  func.func @transform_2(%arg0: i32) -> (i32, i32) {
    %c0_i32 = arith.constant 0 : i32
    %c0_i32_0 = arith.constant 0 : i32
    %c0_i32_1 = arith.constant 0 : i32
    return %c0_i32, %c0_i32_0 : i32, i32
  }
  func.func @transform_3(%arg0: i32) -> (i32, i32) {
    %c0_i32 = arith.constant 0 : i32
    %c0_i32_0 = arith.constant 0 : i32
    %c0_i32_1 = arith.constant 0 : i32
    return %c0_i32, %c0_i32_0 : i32, i32
  }
  func.func @transform_4(%arg0: i32) -> (i32, i32) {
    %c0_i32 = arith.constant 0 : i32
    %c0_i32_0 = arith.constant 0 : i32
    %c0_i32_1 = arith.constant 0 : i32
    return %c0_i32, %c0_i32_0 : i32, i32
  }
  func.func @transform_5(%arg0: i32) -> (i32, i32) {
    %c0_i32 = arith.constant 0 : i32
    %c0_i32_0 = arith.constant 0 : i32
    return %arg0, %c0_i32 : i32, i32
  }
}

</mosaic_0001>

<bundles_post_ra>
// kernel: mdn_forward.1
= control target key start
LH: loop header
LB: loop body
LE: loop exit
PB: predicated region body
PF: predicated region fallthrough
CT: control target
= control target key end

     0   :  { %10 = vsyncpa [#allocation3], 0  ;;  %s2105_s0 = inlined_call_operand.hbm [shape: f32[8,16], index: 0, kind: input, shape index: {}]   ;;  %s2106_s1 = inlined_call_operand.hbm [shape: f32[16,128], index: 1, kind: input, shape index: {}]   ;;  %s2107_s2 = inlined_call_operand.vmem [shape: f32[1,128], index: 2, kind: input, shape index: {}]   ;;  %s2108_s3 = inlined_call_operand.hbm [shape: f32[128,128], index: 3, kind: input, shape index: {}]   ;;  %s2109_s4 = inlined_call_operand.vmem [shape: f32[1,128], index: 4, kind: input, shape index: {}]   ;;  %s2110_s5 = inlined_call_operand.vmem [shape: f32[8,128], index: 5, kind: output, shape index: {}]  }
   0x1   :  { %11 = vsyncpa [#allocation5], 0  ;;  %s1667_s18 = smov [#allocation4]  }
   0x2   :  { %s27_s19 = sshll.u32 %s1667_s18, 4  ;;  %s28_s19 = int_to_ptr.vmem [resolvable:$true] %s27_s19 }
   0x3   :  { %s1611_s20 = scalar_lea.vmem %s28_s19, 256  ;;  %p1616_p1 = scmp.lt.s32.totalorder %s28_s19, %s28_s19 }
   0x4   :  { %p1612_p0 = scmp.ne.s32.totalorder %s28_s19, %s1611_s20  ;;  %p1617_p2 = scmp.lt.s32.totalorder %s1611_s20, %s1611_s20 }
   0x6   :  { %p1618_p3 = por %p1617_p2, %p1616_p1 }
   0x8   :  { %p1619_p4 = pnand %p1618_p3, %p1612_p0 }
   0xa   :  { %1622 = shalt.err (!%p1619_p4)
}
   0xb   :  { %s1668_s21 = smov 128   ;;  %s1669_s22 = smov 8  }
   0xc   :  { %33 = dma.hbm_to_vmem [thread:$0]  %s2106_s1, 256, %s28_s19, [#allocation5], %s1668_s21, %s1668_s21, %s1669_s22  }
   0xd   :  { %s1670_s25 = smov [#allocation2]   ;;  %s1671_s27 = smov [#allocation6]  }
   0xe   :  { %s18_s26 = sshll.u32 %s1670_s25, 4  ;;  %s41_s28 = sshll.u32 %s1671_s27, 4  ;;  %s19_s26 = int_to_ptr.vmem [resolvable:$true] %s18_s26  ;;  %s42_s28 = int_to_ptr.vmem [resolvable:$true] %s41_s28 }
   0xf   :  { %s1631_s29 = scalar_lea.vmem %s19_s26, 128  ;;  %p1636_p6 = scmp.lt.s32.totalorder %s19_s26, %s19_s26 }
  0x10   :  { %p1632_p5 = scmp.ne.s32.totalorder %s19_s26, %s1631_s29  ;;  %p1637_p7 = scmp.lt.s32.totalorder %s1631_s29, %s1631_s29 }
  0x12   :  { %p1638_p8 = por %p1637_p7, %p1636_p6 }
  0x14   :  { %p1639_p9 = pnand %p1638_p8, %p1632_p5 }
  0x16   :  { %1642 = shalt.err (!%p1639_p9)
}
  0x17   :  { %21 = dma.hbm_to_vmem [thread:$0]  %s2105_s0, 128, %s19_s26, [#allocation3]  }
  0x18   :  { %s1651_s7 = scalar_lea.vmem %s42_s28, 2048  ;;  %p1656_p11 = scmp.lt.s32.totalorder %s42_s28, %s42_s28 }
  0x19   :  { %p1652_p10 = scmp.ne.s32.totalorder %s42_s28, %s1651_s7  ;;  %p1657_p12 = scmp.lt.s32.totalorder %s1651_s7, %s1651_s7 }
  0x1b   :  { %p1658_p13 = por %p1657_p12, %p1656_p11 }
  0x1d   :  { %p1659_p0 = pnand %p1658_p13, %p1652_p10 }
  0x1f   :  { %1662 = shalt.err (!%p1659_p0)
}
  0x20   :  { %47 = dma.hbm_to_vmem [thread:$0]  %s2108_s3, 2048, %s42_s28, [#allocation5], %s1668_s21, %s1668_s21, %s1669_s22  }
  0x21   :  { %1663 = dma.done.wait [#allocation3], 128  }
  0x22   :  { %1664 = vsyncadd [#allocation3], 4294967168 }
  0x23   :  { %1665 = dma.done.wait [#allocation5], 2304  }
  0x24   :  { %1666 = vsyncadd [#allocation5], 4294964992  ;;  %v1672_v0 = vmov 0.0   ;;  %vm1673_vm0 = vmmov 0   ;;  %vm69_vm1 = vcmask 130048   ;;  %v61_v1 = vld [vmem:[#allocation4 + $0x8] sm:$0xff] }
  0x25   :  { %1340 = vmatprep.subr.mxu0 %v1672_v0  ;;  %1347 = vmatprep.subr.mxu1 %v1672_v0  ;;  %v60_v2 = vld [vmem:[#allocation4] sm:$0xff]  ;;  %v59_v3 = vld [vmem:[#allocation2] sm:$0xff]  ;;  %v102_v4 = vand.u32 4294901760, %v61_v1  ;;  %v552_v20 = vld [vmem:[#allocation6 + $0x78] sm:$0xff] }
  0x26   :  { %1344 = vmatprep.mubr.msk.f32.mxu0 %vm1673_vm0, %v1672_v0  ;;  %1351 = vmatprep.mubr.msk.f32.mxu1 %vm1673_vm0, %v1672_v0  ;;  %v105_v5 = vand.u32 4294901760, %v60_v2  ;;  %v71_v6 = vsel %vm69_vm1, %v59_v3, 0  ;;  %v1743_v21 = vand.u32 4294901760, %v552_v20  ;;  %v551_v22 = vld [vmem:[#allocation6 + $0x70] sm:$0xff]  ;;  %v550_v25 = vld [vmem:[#allocation6 + $0x68] sm:$0xff]  ;;  %v549_v29 = vld [vmem:[#allocation6 + $0x60] sm:$0xff] }
  0x27   :  { %v140_v7 = vand.u32 4294901760, %v71_v6  ;;  %1341 = vmatpush3.msra.mxu0 %v102_v4  ;;  %v180_v8 = vsub.f32 %v61_v1, %v102_v4  ;;  %v1748_v24 = vand.u32 4294901760, %v551_v22  ;;  %v1756_v28 = vand.u32 4294901760, %v550_v25  ;;  %v548_v34 = vld [vmem:[#allocation6 + $0x58] sm:$0xff]  ;;  %v547_v40 = vld [vmem:[#allocation6 + $0x50] sm:$0xff]  ;;  %v546_v46 = vld [vmem:[#allocation6 + $0x48] sm:$0xff] }
  0x28   :  { %v187_v9 = vsub.f32 %v60_v2, %v105_v5  ;;  %1342 = vmatprep.subr.mxu0 %v1672_v0  ;;  %v1746_v23 = vsub.f32 %v552_v20, %v1743_v21  ;;  %v1767_v33 = vand.u32 4294901760, %v549_v29  ;;  %v1779_v39 = vand.u32 4294901760, %v548_v34  ;;  %v545_v52 = vld [vmem:[#allocation6 + $0x40] sm:$0xff]  ;;  %v544_v58 = vld [vmem:[#allocation6 + $0x38] sm:$0xff]  ;;  %v543_v1 = vld [vmem:[#allocation6 + $0x30] sm:$0xff] }
  0x29   :  { %v141_v10 = vsub.f32 %v71_v6, %v140_v7  ;;  %1343 = vmatpush3.msra.mxu0 %v105_v5  ;;  %v181_v11 = vand.u32 4294901760, %v180_v8  ;;  %v1754_v27 = vsub.f32 %v551_v22, %v1748_v24  ;;  %v1765_v32 = vsub.f32 %v550_v25, %v1756_v28 }
  0x2a   :  { %v188_v12 = vand.u32 4294901760, %v187_v9  ;;  %1354 = vmatprep.subr.mxu0 %v1672_v0  ;;  %v654_v26 = vand.u32 4294901760, %v1746_v23  ;;  %v1776_v38 = vsub.f32 %v549_v29, %v1767_v33  ;;  %v1786_v44 = vand.u32 4294901760, %v547_v40 }
  0x2b   :  { %v142_v13 = vand.u32 4294901760, %v141_v10  ;;  %v182_v14 = vsub.f32 %v180_v8, %v181_v11  ;;  %v661_v31 = vand.u32 4294901760, %v1754_v27  ;;  %v668_v37 = vand.u32 4294901760, %v1765_v32 }
  0x2c   :  { %v189_v15 = vsub.f32 %v187_v9, %v188_v12  ;;  %v655_v30 = vsub.f32 %v1746_v23, %v654_v26  ;;  %v675_v43 = vand.u32 4294901760, %v1776_v38  ;;  %v1790_v45 = vsub.f32 %v548_v34, %v1779_v39  ;;  %v539_v34 = vld [vmem:[#allocation6 + $0x10] sm:$0xff] }
  0x2d   :  { %v143_v16 = vsub.f32 %v141_v10, %v142_v13  ;;  %v183_v17 = vand.u32 4294901760, %v182_v14  ;;  %v662_v36 = vsub.f32 %v1754_v27, %v661_v31  ;;  %v669_v42 = vsub.f32 %v1765_v32, %v668_v37 }
  0x2e   :  { %v190_v18 = vand.u32 4294901760, %v189_v15  ;;  %v656_v35 = vand.u32 4294901760, %v655_v30  ;;  %v676_v48 = vsub.f32 %v1776_v38, %v675_v43  ;;  %v1797_v49 = vsub.f32 %v547_v40, %v1786_v44 }
  0x2f   :  { %v144_v19 = vand.u32 4294901760, %v143_v16  ;;  %1348 = vmatpush3.msra.mxu1 %v183_v17  ;;  %v663_v41 = vand.u32 4294901760, %v662_v36  ;;  %v670_v47 = vand.u32 4294901760, %v669_v42  ;;  %v1799_v50 = vand.u32 4294901760, %v546_v46 }
  0x30   :  { %1349 = vmatprep.subr.mxu1 %v1672_v0  ;;  %v682_v51 = vand.u32 4294901760, %v1790_v45  ;;  %v677_v53 = vand.u32 4294901760, %v676_v48  ;;  %v689_v54 = vand.u32 4294901760, %v1797_v49  ;;  %v1809_v56 = vand.u32 4294901760, %v545_v52 }
  0x31   :  { %1345 = vmatmul.mubr.f32.vlgmr.msra.gmra.mxu0 %v144_v19  ;;  %1350 = vmatpush3.msra.mxu1 %v190_v18  ;;  %v1807_v55 = vsub.f32 %v546_v46, %v1799_v50  ;;  %v1824_v62 = vand.u32 4294901760, %v544_v58  ;;  %v1837_v6 = vand.u32 4294901760, %v543_v1  ;;  %v540_v19 = vld [vmem:[#allocation6 + $0x18] sm:$0xff]  ;;  %v538_v46 = vld [vmem:[#allocation6 + $0x8] sm:$0xff] }
  0x32   :  { %1355 = vmatpush3.msra.mxu0 %v180_v8  ;;  %1352 = vmatmul.mubr.f32.vlgmr.msra.gmra.mxu1 %v140_v7  ;;  %v683_v57 = vsub.f32 %v1790_v45, %v682_v51  ;;  %v690_v59 = vsub.f32 %v1797_v49, %v689_v54  ;;  %v1822_v61 = vsub.f32 %v545_v52, %v1809_v56  ;;  %v1869_v29 = vand.u32 4294901760, %v540_v19 }
  0x33   :  { %1356 = vmatprep.subr.mxu0 %v1672_v0  ;;  %1361 = vmatprep.subr.mxu1 %v1672_v0  ;;  %v696_v60 = vand.u32 4294901760, %v1807_v55 }
  0x34   :  { %1357 = vmatpush3.msra.mxu0 %v187_v9  ;;  %1358 = vmatprep.mubr.msk.f32.mxu0 %vm1673_vm0, %v1672_v0  ;;  %v684_v63 = vand.u32 4294901760, %v683_v57  ;;  %v691_v2 = vand.u32 4294901760, %v690_v59  ;;  %v1882_v40 = vsub.f32 %v540_v19, %v1869_v29  ;;  %v1897_v57 = vand.u32 4294901760, %v538_v46 }
  0x35   :  { %1362 = vmatpush3.msra.mxu1 %v102_v4  ;;  %1359 = vmatmul.mubr.f32.vlgmr.msra.gmra.mxu0 %v141_v10  ;;  %v697_v3 = vsub.f32 %v1807_v55, %v696_v60 }
  0x36   :  { %1363 = vmatprep.subr.mxu1 %v1672_v0  ;;  %1368 = vmatprep.subr.mxu0 %v1672_v0  ;;  %v2114_v52 = vand.u32 4294901760, %v1882_v40 }
  0x37   :  { %1364 = vmatpush3.msra.mxu1 %v105_v5  ;;  %1365 = vmatprep.mubr.msk.f32.mxu1 %vm1673_vm0, %v1672_v0  ;;  %v698_v8 = vand.u32 4294901760, %v697_v3  ;;  %v1909_v3 = vsub.f32 %v538_v46, %v1897_v57 }
  0x38   :  { %1369 = vmatpush3.msra.mxu0 %v181_v11  ;;  %1366 = vmatmul.mubr.f32.vlgmr.msra.gmra.mxu1 %v142_v13  ;;  %v541_v13 = vld [vmem:[#allocation6 + $0x20] sm:$0xff] }
  0x39   :  { %1370 = vmatprep.subr.mxu0 %v1672_v0  ;;  %1375 = vmatprep.subr.mxu1 %v1672_v0  ;;  %v1859_v17 = vand.u32 4294901760, %v541_v13 }
  0x3a   :  { %1371 = vmatpush3.msra.mxu0 %v188_v12  ;;  %1372 = vmatprep.mubr.msk.f32.mxu0 %vm1673_vm0, %v1672_v0  ;;  %v1849_v12 = vsub.f32 %v543_v1, %v1837_v6 }
  0x3b   :  { %1376 = vmatpush3.msra.mxu1 %v102_v4  ;;  %1373 = vmatmul.mubr.f32.vlgmr.msra.gmra.mxu0 %v140_v7  ;;  %v703_v4 = vand.u32 4294901760, %v1822_v61  ;;  %v1867_v25 = vsub.f32 %v541_v13, %v1859_v17  ;;  %v2112_v13 = vand.u32 4294901760, %v1909_v3 }
  0x3c   :  { %1377 = vmatprep.subr.mxu1 %v1672_v0  ;;  %1379 = vmatprep.mubr.msk.f32.mxu1 %vm1673_vm0, %v1672_v0  ;;  %v717_v18 = vand.u32 4294901760, %v1849_v12 }
  0x3d   :  { %1378 = vmatpush3.msra.mxu1 %v105_v5  ;;  %1382 = vmatprep.subr.mxu0 %v1672_v0  ;;  %v1834_v5 = vsub.f32 %v544_v58, %v1824_v62  ;;  %v704_v9 = vsub.f32 %v1822_v61, %v703_v4  ;;  %v2115_v36 = vand.u32 4294901760, %v1867_v25  ;;  %v537_v58 = vld [vmem:[#allocation6] sm:$0xff]  ;;  %v753_v19 = vsub.f32 %v1909_v3, %v2112_v13 }
  0x3e   :  { %1380 = vmatmul.mubr.f32.vlgmr.msra.gmra.mxu1 %v140_v7  ;;  %1417 = vmatprep.subr.mxu1 %v1672_v0  ;;  %v542_v7 = vld [vmem:[#allocation6 + $0x28] sm:$0xff]  ;;  %v718_v30 = vsub.f32 %v1849_v12, %v717_v18 }
  0x3f   :  { %1449 = vmatprep.mubr.msk.f32.mxu1 %vm1673_vm0, %v1672_v0  ;;  %1414 = vmatprep.mubr.msk.f32.mxu0 %vm1673_vm0, %v1672_v0  ;;  %v710_v10 = vand.u32 4294901760, %v1834_v5  ;;  %v1845_v11 = vand.u32 4294901760, %v542_v7  ;;  %v705_v14 = vand.u32 4294901760, %v704_v9  ;;  %v732_v48 = vsub.f32 %v1867_v25, %v2115_v36 }
  0x40   :  { %1383 = vmatpush3.msra.mxu0 %v1743_v21  ;;  %1418 = vmatpush3.msra.mxu1 %v656_v35  ;;  %v719_v42 = vand.u32 4294901760, %v718_v30  ;;  %v754_v30 = vand.u32 4294901760, %v753_v19 }
  0x41   :  { %1384 = vmatprep.subr.mxu0 %v1672_v0  ;;  %1419 = vmatprep.subr.mxu1 %v1672_v0  ;;  %v711_v15 = vsub.f32 %v1834_v5, %v710_v10  ;;  %v1857_v16 = vsub.f32 %v542_v7, %v1845_v11  ;;  %v733_v59 = vand.u32 4294901760, %v732_v48 }
  0x42   :  { %1385 = vmatpush3.msra.mxu0 %v1748_v24  ;;  %1420 = vmatpush3.msra.mxu1 %v663_v41  ;;  %v1884_v41 = vand.u32 4294901760, %v539_v34 }
  0x43   :  { %1386 = vmatprep.subr.mxu0 %v1672_v0  ;;  %1421 = vmatprep.subr.mxu1 %v1672_v0  ;;  %v712_v20 = vand.u32 4294901760, %v711_v15  ;;  %v2116_v22 = vand.u32 4294901760, %v1857_v16 }
  0x44   :  { %1387 = vmatpush3.msra.mxu0 %v1756_v28  ;;  %1422 = vmatpush3.msra.mxu1 %v670_v47 }
  0x45   :  { %1388 = vmatprep.subr.mxu0 %v1672_v0  ;;  %1423 = vmatprep.subr.mxu1 %v1672_v0  ;;  %v725_v35 = vsub.f32 %v1857_v16, %v2116_v22 }
  0x46   :  { %1389 = vmatpush3.msra.mxu0 %v1767_v33  ;;  %1424 = vmatpush3.msra.mxu1 %v677_v53  ;;  %v1894_v53 = vsub.f32 %v539_v34, %v1884_v41 }
  0x47   :  { %1390 = vmatprep.subr.mxu0 %v1672_v0  ;;  %1425 = vmatprep.subr.mxu1 %v1672_v0  ;;  %v726_v47 = vand.u32 4294901760, %v725_v35  ;;  %v1218_v35 = vld [vmem:[%s2107_s2] ss:$0 sm:$0xff] }
  0x48   :  { %1391 = vmatpush3.msra.mxu0 %v1779_v39  ;;  %1426 = vmatpush3.msra.mxu1 %v684_v63  ;;  %v739_v63 = vsub.f32 %v1882_v40, %v2114_v52  ;;  %v2113_v1 = vand.u32 4294901760, %v1894_v53 }
  0x49   :  { %1392 = vmatprep.subr.mxu0 %v1672_v0  ;;  %1427 = vmatprep.subr.mxu1 %v1672_v0 }
  0x4a   :  { %1393 = vmatpush3.msra.mxu0 %v1786_v44  ;;  %1428 = vmatpush3.msra.mxu1 %v691_v2  ;;  %v1905_v2 = vand.u32 4294901760, %v537_v58  ;;  %v740_v7 = vand.u32 4294901760, %v739_v63 }
  0x4b   :  { %1394 = vmatprep.subr.mxu0 %v1672_v0  ;;  %1429 = vmatprep.subr.mxu1 %v1672_v0 }
  0x4c   :  { %1395 = vmatpush3.msra.mxu0 %v1799_v50  ;;  %1430 = vmatpush3.msra.mxu1 %v698_v8  ;;  %v746_v8 = vsub.f32 %v1894_v53, %v2113_v1  ;;  %v1917_v9 = vsub.f32 %v537_v58, %v1905_v2 }
  0x4d   :  { %1396 = vmatprep.subr.mxu0 %v1672_v0  ;;  %1431 = vmatprep.subr.mxu1 %v1672_v0 }
  0x4e   :  { %1397 = vmatpush3.msra.mxu0 %v1809_v56  ;;  %1432 = vmatpush3.msra.mxu1 %v705_v14  ;;  %v747_v14 = vand.u32 4294901760, %v746_v8  ;;  %v2111_v15 = vand.u32 4294901760, %v1917_v9 }
  0x4f   :  { %1398 = vmatprep.subr.mxu0 %v1672_v0  ;;  %1433 = vmatprep.subr.mxu1 %v1672_v0 }
  0x50   :  { %1399 = vmatpush3.msra.mxu0 %v1824_v62  ;;  %1434 = vmatpush3.msra.mxu1 %v712_v20  ;;  %v760_v20 = vsub.f32 %v1917_v9, %v2111_v15 }
  0x51   :  { %1400 = vmatprep.subr.mxu0 %v1672_v0  ;;  %1435 = vmatprep.subr.mxu1 %v1672_v0 }
  0x52   :  { %1401 = vmatpush3.msra.mxu0 %v1837_v6  ;;  %1436 = vmatpush3.msra.mxu1 %v719_v42  ;;  %v761_v34 = vand.u32 4294901760, %v760_v20 }
  0x53   :  { %1402 = vmatprep.subr.mxu0 %v1672_v0  ;;  %1437 = vmatprep.subr.mxu1 %v1672_v0 }
  0x54   :  { %1403 = vmatpush3.msra.mxu0 %v1845_v11  ;;  %1438 = vmatpush3.msra.mxu1 %v726_v47 }
  0x55   :  { %1404 = vmatprep.subr.mxu0 %v1672_v0  ;;  %1439 = vmatprep.subr.mxu1 %v1672_v0 }
  0x56   :  { %1405 = vmatpush3.msra.mxu0 %v1859_v17  ;;  %1440 = vmatpush3.msra.mxu1 %v733_v59 }
  0x57   :  { %1406 = vmatprep.subr.mxu0 %v1672_v0  ;;  %1441 = vmatprep.subr.mxu1 %v1672_v0 }
  0x58   :  { %1407 = vmatpush3.msra.mxu0 %v1869_v29  ;;  %1442 = vmatpush3.msra.mxu1 %v740_v7 }
  0x59   :  { %1408 = vmatprep.subr.mxu0 %v1672_v0  ;;  %1443 = vmatprep.subr.mxu1 %v1672_v0 }
  0x5a   :  { %1409 = vmatpush3.msra.mxu0 %v1884_v41  ;;  %1444 = vmatpush3.msra.mxu1 %v747_v14 }
  0x5b   :  { %1410 = vmatprep.subr.mxu0 %v1672_v0  ;;  %1445 = vmatprep.subr.mxu1 %v1672_v0 }
  0x5c   :  { %1411 = vmatpush3.msra.mxu0 %v1897_v57  ;;  %1446 = vmatpush3.msra.mxu1 %v754_v30 }
  0x5d   :  { %1412 = vmatprep.subr.mxu0 %v1672_v0  ;;  %1447 = vmatprep.subr.mxu1 %v1672_v0 }
  0x5e   :  { %1413 = vmatpush3.msra.mxu0 %v1905_v2  ;;  %1448 = vmatpush3.msra.mxu1 %v761_v34 }
  0x5f   :  { %1452 = vmatprep.subr.mxu0 %v1672_v0  ;;  %1487 = vmatprep.subr.mxu1 %v1672_v0 }
  0xf1   :  { %v146_v42 = vpop.f32.mrf.mxu0 }
  0xf2   :  { %v147_v46 = vadd.f32 %v1218_v35, %v146_v42  ;;  %v227_v48 = vpop.f32.mrf.mxu1 }
  0xf3   :  { %v1346_v47 = vpop.f32.mrf.mxu0 }
  0xf4   :  { %v228_v58 = vadd.f32 %v227_v48, %v147_v46  ;;  %v1353_v59 = vpop.f32.mrf.mxu1 }
  0xf5   :  { %v303_v63 = vpop.f32.mrf.mxu0 }
  0xf6   :  { %v304_v7 = vadd.f32 %v303_v63, %v228_v58 }
  0xf7   :  { %v1360_v8 = vpop.f32.mrf.mxu0 }
  0xf8   :  { %v378_v14 = vpop.f32.mrf.mxu1 }
  0xf9   :  { %v379_v19 = vadd.f32 %v378_v14, %v304_v7 }
  0xfa   :  { %v1367_v20 = vpop.f32.mrf.mxu1 }
  0xfb   :  { %v455_v30 = vpop.f32.mrf.mxu0 }
  0xfc   :  { %v456_v34 = vadd.f32 %v455_v30, %v379_v19 }
  0xfd   :  { %v1374_v15 = vpop.f32.mrf.mxu0 }
  0xfe   :  { %v528_v13 = vpop.f32.mrf.mxu1 }
  0xff   :  { %v529_v1 = vadd.f32 %v528_v13, %v456_v34 }
 0x100   :  { %v1381_v52 = vpop.f32.mrf.mxu1 }
 0x101   :  { %v533_v36 = vmul.f32 0.70710677, %v529_v1  ;;  %v532_v35 = vmul.f32 0.5, %v529_v1 }
 0x103   :  { %1599 = verf.f32 %v533_v36 }
 0x110   :  { %v1600_v22 = vpop.eup %1599 }
 0x111   :  { %v535_v42 = vadd.f32 1.0, %v1600_v22 }
 0x113   :  { %v536_v47 = vmul.f32 %v535_v42, %v532_v35 }
 0x115   :  { %v1938_v46 = vand.u32 4294901760, %v536_v47 }
 0x117   :  { %v1941_v48 = vsub.f32 %v536_v47, %v1938_v46  ;;  %1450 = vmatmul.mubr.f32.vlgmr.msra.gmra.mxu1 %v1938_v46 }
 0x118   :  { %1488 = vmatpush3.msra.mxu1 %v1743_v21  ;;  %1519 = vmatprep.mubr.msk.f32.mxu1 %vm1673_vm0, %v1672_v0 }
 0x119   :  { %1489 = vmatprep.subr.mxu1 %v1672_v0  ;;  %v643_v36 = vand.u32 4294901760, %v1941_v48 }
 0x11a   :  { %1490 = vmatpush3.msra.mxu1 %v1748_v24 }
 0x11b   :  { %1491 = vmatprep.subr.mxu1 %v1672_v0  ;;  %v644_v22 = vsub.f32 %v1941_v48, %v643_v36 }
 0x11c   :  { %1492 = vmatpush3.msra.mxu1 %v1756_v28 }
 0x11d   :  { %1493 = vmatprep.subr.mxu1 %v1672_v0  ;;  %v645_v52 = vand.u32 4294901760, %v644_v22 }
 0x11e   :  { %1494 = vmatpush3.msra.mxu1 %v1767_v33 }
 0x11f   :  { %1495 = vmatprep.subr.mxu1 %v1672_v0  ;;  %1415 = vmatmul.mubr.f32.vlgmr.msra.gmra.mxu0 %v645_v52 }
 0x120   :  { %1453 = vmatpush3.msra.mxu0 %v1746_v23  ;;  %1496 = vmatpush3.msra.mxu1 %v1779_v39  ;;  %v2118_v23 = vand.u32 4294901760, %v1867_v25 }
 0x121   :  { %1454 = vmatprep.subr.mxu0 %v1672_v0  ;;  %1497 = vmatprep.subr.mxu1 %v1672_v0 }
 0x122   :  { %1455 = vmatpush3.msra.mxu0 %v1754_v27  ;;  %1498 = vmatpush3.msra.mxu1 %v1786_v44  ;;  %v2121_v27 = vand.u32 4294901760, %v1909_v3 }
 0x123   :  { %1456 = vmatprep.subr.mxu0 %v1672_v0  ;;  %1499 = vmatprep.subr.mxu1 %v1672_v0 }
 0x124   :  { %1457 = vmatpush3.msra.mxu0 %v1765_v32  ;;  %1500 = vmatpush3.msra.mxu1 %v1799_v50 }
 0x125   :  { %1458 = vmatprep.subr.mxu0 %v1672_v0  ;;  %1501 = vmatprep.subr.mxu1 %v1672_v0 }
 0x126   :  { %1459 = vmatpush3.msra.mxu0 %v1776_v38  ;;  %1502 = vmatpush3.msra.mxu1 %v1809_v56 }
 0x127   :  { %1460 = vmatprep.subr.mxu0 %v1672_v0  ;;  %1503 = vmatprep.subr.mxu1 %v1672_v0 }
 0x128   :  { %1461 = vmatpush3.msra.mxu0 %v1790_v45  ;;  %1504 = vmatpush3.msra.mxu1 %v1824_v62  ;;  %v1219_v45 = vld [vmem:[%s2109_s4] ss:$0 sm:$0xff] }
 0x129   :  { %1462 = vmatprep.subr.mxu0 %v1672_v0  ;;  %1505 = vmatprep.subr.mxu1 %v1672_v0 }
 0x12a   :  { %1463 = vmatpush3.msra.mxu0 %v1797_v49  ;;  %1506 = vmatpush3.msra.mxu1 %v1837_v6 }
 0x12b   :  { %1464 = vmatprep.subr.mxu0 %v1672_v0  ;;  %1507 = vmatprep.subr.mxu1 %v1672_v0 }
 0x12c   :  { %1465 = vmatpush3.msra.mxu0 %v1807_v55  ;;  %1508 = vmatpush3.msra.mxu1 %v1845_v11 }
 0x12d   :  { %1466 = vmatprep.subr.mxu0 %v1672_v0  ;;  %1509 = vmatprep.subr.mxu1 %v1672_v0 }
 0x12e   :  { %1467 = vmatpush3.msra.mxu0 %v1822_v61  ;;  %1510 = vmatpush3.msra.mxu1 %v1859_v17 }
 0x12f   :  { %1468 = vmatprep.subr.mxu0 %v1672_v0  ;;  %1511 = vmatprep.subr.mxu1 %v1672_v0 }
 0x130   :  { %1469 = vmatpush3.msra.mxu0 %v1834_v5  ;;  %1512 = vmatpush3.msra.mxu1 %v1869_v29  ;;  %v1201_v5 = vlaneseq }
 0x131   :  { %1470 = vmatprep.subr.mxu0 %v1672_v0  ;;  %1513 = vmatprep.subr.mxu1 %v1672_v0 }
 0x132   :  { %1471 = vmatpush3.msra.mxu0 %v1849_v12  ;;  %1514 = vmatpush3.msra.mxu1 %v1884_v41 }
 0x133   :  { %1472 = vmatprep.subr.mxu0 %v1672_v0  ;;  %1515 = vmatprep.subr.mxu1 %v1672_v0 }
 0x134   :  { %1473 = vmatpush3.msra.mxu0 %v1857_v16  ;;  %1516 = vmatpush3.msra.mxu1 %v1897_v57 }
 0x135   :  { %1474 = vmatprep.subr.mxu0 %v1672_v0  ;;  %1517 = vmatprep.subr.mxu1 %v1672_v0 }
 0x136   :  { %1475 = vmatpush3.msra.mxu0 %v1867_v25  ;;  %1518 = vmatpush3.msra.mxu1 %v1905_v2 }
 0x137   :  { %1476 = vmatprep.subr.mxu0 %v1672_v0  ;;  %1520 = vmatmul.mubr.f32.vlgmr.msra.gmra.mxu1 %v643_v36 }
 0x138   :  { %1557 = vmatprep.subr.mxu1 %v1672_v0  ;;  %1477 = vmatpush3.msra.mxu0 %v1882_v40 }
 0x139   :  { %1558 = vmatpush3.msra.mxu1 %v1743_v21  ;;  %1478 = vmatprep.subr.mxu0 %v1672_v0  ;;  %v2117_v21 = vand.u32 4294901760, %v1857_v16 }
 0x13a   :  { %1559 = vmatprep.subr.mxu1 %v1672_v0  ;;  %1479 = vmatpush3.msra.mxu0 %v1894_v53 }
 0x13b   :  { %1560 = vmatpush3.msra.mxu1 %v1748_v24  ;;  %1480 = vmatprep.subr.mxu0 %v1672_v0  ;;  %v2119_v24 = vand.u32 4294901760, %v1882_v40 }
 0x13c   :  { %1561 = vmatprep.subr.mxu1 %v1672_v0  ;;  %1481 = vmatpush3.msra.mxu0 %v1909_v3 }
 0x13d   :  { %1562 = vmatpush3.msra.mxu1 %v1756_v28  ;;  %1482 = vmatprep.subr.mxu0 %v1672_v0  ;;  %v2122_v28 = vand.u32 4294901760, %v1917_v9 }
 0x13e   :  { %1563 = vmatprep.subr.mxu1 %v1672_v0  ;;  %1483 = vmatpush3.msra.mxu0 %v1917_v9 }
 0x13f   :  { %1484 = vmatprep.mubr.msk.f32.mxu0 %vm1673_vm0, %v1672_v0  ;;  %1564 = vmatpush3.msra.mxu1 %v1767_v33 }
 0x140   :  { %1485 = vmatmul.mubr.f32.vlgmr.msra.gmra.mxu0 %v1941_v48  ;;  %1522 = vmatprep.subr.mxu0 %v1672_v0 }
 0x141   :  { %1565 = vmatprep.subr.mxu1 %v1672_v0  ;;  %1523 = vmatpush3.msra.mxu0 %v654_v26  ;;  %v2120_v26 = vand.u32 4294901760, %v1894_v53 }
 0x142   :  { %1566 = vmatpush3.msra.mxu1 %v1779_v39  ;;  %1524 = vmatprep.subr.mxu0 %v1672_v0 }
 0x143   :  { %1567 = vmatprep.subr.mxu1 %v1672_v0  ;;  %1525 = vmatpush3.msra.mxu0 %v661_v31 }
 0x144   :  { %1568 = vmatpush3.msra.mxu1 %v1786_v44  ;;  %1526 = vmatprep.subr.mxu0 %v1672_v0 }
 0x145   :  { %1569 = vmatprep.subr.mxu1 %v1672_v0  ;;  %1527 = vmatpush3.msra.mxu0 %v668_v37 }
 0x146   :  { %1570 = vmatpush3.msra.mxu1 %v1799_v50  ;;  %1528 = vmatprep.subr.mxu0 %v1672_v0 }
 0x147   :  { %1571 = vmatprep.subr.mxu1 %v1672_v0  ;;  %1529 = vmatpush3.msra.mxu0 %v675_v43 }
 0x148   :  { %1572 = vmatpush3.msra.mxu1 %v1809_v56  ;;  %1530 = vmatprep.subr.mxu0 %v1672_v0 }
 0x149   :  { %1573 = vmatprep.subr.mxu1 %v1672_v0  ;;  %1531 = vmatpush3.msra.mxu0 %v682_v51 }
 0x14a   :  { %1574 = vmatpush3.msra.mxu1 %v1824_v62  ;;  %1532 = vmatprep.subr.mxu0 %v1672_v0 }
 0x14b   :  { %1575 = vmatprep.subr.mxu1 %v1672_v0  ;;  %1533 = vmatpush3.msra.mxu0 %v689_v54 }
 0x14c   :  { %1576 = vmatpush3.msra.mxu1 %v1837_v6  ;;  %1534 = vmatprep.subr.mxu0 %v1672_v0  ;;  %v1202_v6 = vand.u32 127, %v1201_v5 }
 0x14d   :  { %1577 = vmatprep.subr.mxu1 %v1672_v0  ;;  %1535 = vmatpush3.msra.mxu0 %v696_v60 }
 0x14e   :  { %1578 = vmatpush3.msra.mxu1 %v1845_v11  ;;  %1536 = vmatprep.subr.mxu0 %v1672_v0  ;;  %vm1203_vm2 = vcmp.ge.s32.totalorder %v1202_v6, 10  ;;  %vm1204_vm3 = vcmp.lt.s32.totalorder %v1202_v6, 18 }
 0x14f   :  { %1579 = vmatprep.subr.mxu1 %v1672_v0  ;;  %1537 = vmatpush3.msra.mxu0 %v703_v4  ;;  %vm1205_vm4 = vmand %vm1203_vm2, %vm1204_vm3 }
 0x150   :  { %1580 = vmatpush3.msra.mxu1 %v1859_v17  ;;  %1538 = vmatprep.subr.mxu0 %v1672_v0 }
 0x151   :  { %1581 = vmatprep.subr.mxu1 %v1672_v0  ;;  %1539 = vmatpush3.msra.mxu0 %v710_v10 }
 0x152   :  { %1582 = vmatpush3.msra.mxu1 %v1869_v29  ;;  %1540 = vmatprep.subr.mxu0 %v1672_v0 }
 0x153   :  { %1583 = vmatprep.subr.mxu1 %v1672_v0  ;;  %1541 = vmatpush3.msra.mxu0 %v717_v18 }
 0x154   :  { %1584 = vmatpush3.msra.mxu1 %v1884_v41  ;;  %1542 = vmatprep.subr.mxu0 %v1672_v0 }
 0x155   :  { %1585 = vmatprep.subr.mxu1 %v1672_v0  ;;  %1543 = vmatpush3.msra.mxu0 %v2117_v21 }
 0x156   :  { %1586 = vmatpush3.msra.mxu1 %v1897_v57  ;;  %1544 = vmatprep.subr.mxu0 %v1672_v0 }
 0x157   :  { %1587 = vmatprep.subr.mxu1 %v1672_v0  ;;  %1545 = vmatpush3.msra.mxu0 %v2118_v23 }
 0x158   :  { %1588 = vmatpush3.msra.mxu1 %v1905_v2  ;;  %1589 = vmatprep.mubr.msk.f32.mxu1 %vm1673_vm0, %v1672_v0 }
 0x159   :  { %1546 = vmatprep.subr.mxu0 %v1672_v0  ;;  %1590 = vmatmul.mubr.f32.vlgmr.msra.gmra.mxu1 %v1938_v46 }
 0x15a   :  { %1547 = vmatpush3.msra.mxu0 %v2119_v24  ;;  %1554 = vmatprep.mubr.msk.f32.mxu0 %vm1673_vm0, %v1672_v0 }
 0x15b   :  { %1548 = vmatprep.subr.mxu0 %v1672_v0 }
 0x15c   :  { %1549 = vmatpush3.msra.mxu0 %v2120_v26 }
 0x15d   :  { %1550 = vmatprep.subr.mxu0 %v1672_v0 }
 0x15e   :  { %1551 = vmatpush3.msra.mxu0 %v2121_v27 }
 0x15f   :  { %1552 = vmatprep.subr.mxu0 %v1672_v0 }
 0x160   :  { %1553 = vmatpush3.msra.mxu0 %v2122_v28 }
 0x161   :  { %1555 = vmatmul.mubr.f32.vlgmr.msra.gmra.mxu0 %v1938_v46 }
 0x1d7   :  { %v798_v31 = vpop.f32.mrf.mxu1 }
 0x1d9   :  { %v1451_v32 = vpop.f32.mrf.mxu1 }
 0x1df   :  { %v647_v33 = vpop.f32.mrf.mxu0 }
 0x1e0   :  { %v648_v49 = vadd.f32 %v1219_v45, %v647_v33 }
 0x1e1   :  { %v1416_v37 = vpop.f32.mrf.mxu0 }
 0x1e2   :  { %v799_v0 = vadd.f32 %v798_v31, %v648_v49 }
 0x1f7   :  { %v991_v38 = vpop.f32.mrf.mxu1 }
 0x1f9   :  { %v1521_v39 = vpop.f32.mrf.mxu1 }
 0x200   :  { %v902_v43 = vpop.f32.mrf.mxu0 }
 0x201   :  { %v903_v54 = vadd.f32 %v902_v43, %v799_v0 }
 0x202   :  { %v1486_v44 = vpop.f32.mrf.mxu0 }
 0x203   :  { %v992_v55 = vadd.f32 %v991_v38, %v903_v54 }
 0x219   :  { %v1197_v50 = vpop.f32.mrf.mxu1 }
 0x21b   :  { %v1591_v51 = vpop.f32.mrf.mxu1 }
 0x221   :  { %v1110_v56 = vpop.f32.mrf.mxu0 }
 0x222   :  { %v1111_v60 = vadd.f32 %v1110_v56, %v992_v55 }
 0x223   :  { %v1556_v61 = vpop.f32.mrf.mxu0 }
 0x224   :  { %v1198_v62 = vadd.f32 %v1197_v50, %v1111_v60 }
 0x226   :  { %v1206_v4 = vmul.f32 1.442695, %v1198_v62 }
 0x228   :  { %1601 = vpow2.f32 %v1206_v4 }
 0x235   :  { %v1602_v10 = vpop.eup %1601 }
 0x236   :  { %v1210_v11 = vsel %vm1205_vm4, %v1602_v10, %v1198_v62 }
 0x237   :  { %1211 = vst [vmem:[%s2110_s5] sm:$0xff] %v1210_v11 }
 0x238   :  { %1216 = vsyncpa [#allocation3], 1 }
 0x239   :  { %1217 = vsyncpa [#allocation5], 1 }

</bundles_post_ra>
